<compile_context>
chip_gen: v5e
topology: v5e:2x2
jax: 0.10.0
libtpu: 0.0.40
codegen_flags: <defaults>
</compile_context>

<pallas_src>
import functools

import jax
import jax.numpy as jnp
from jax.experimental import pallas as pl
from jax.experimental.pallas import tpu as pltpu


def _round_up(x, m):
    return ((x + m - 1) // m) * m


def _focal_loss_kernel(pred_ref, true_ref, out_ref, *, gamma, alpha):
    # Grid: (n_par "parallel", n_steps "arbitrary").  The output block (1, 8, 128)
    # is indexed only by the parallel axis, so it stays resident across the
    # reduction axis and acts as the accumulator (P3 pattern).
    k = pl.program_id(1)

    @pl.when(k == 0)
    def _():
        out_ref[...] = jnp.zeros_like(out_ref)

    x = pred_ref[...].astype(jnp.float32)
    y = true_ref[...].astype(jnp.float32)

    # One EUP exp, reused for both BCE and sigmoid.
    e = jnp.exp(-jnp.abs(x))
    # BCEWithLogitsLoss (reduction='none'), numerically stable form.
    bce = jnp.maximum(x, 0.0) - x * y + jnp.log1p(e)
    # sigmoid(x) from e:  x>=0 -> 1/(1+e),  x<0 -> e/(1+e)
    inv = 1.0 / (1.0 + e)
    p = jnp.where(x >= 0.0, inv, e * inv)

    # Focal modulation, exactly as in the PyTorch module.
    p_t = y * p + (1.0 - y) * (1.0 - alpha)
    alpha_factor = y * alpha + (1.0 - y) * (1.0 - alpha)
    t = 1.0 - p_t
    if gamma == 0.0:
        mod = jnp.ones_like(t)
    elif gamma == 1.0:
        mod = t
    elif gamma == 1.5:
        mod = t * jnp.sqrt(t)          # avoids exp+log of jnp.power
    elif gamma == 2.0:
        mod = t * t
    else:
        mod = jnp.power(t, gamma)      # generic fallback
    loss = bce * alpha_factor * mod

    # Fold (tile_rows, 128) -> (8, 128) with VALU adds only; accumulate into the
    # resident output block.  Cross-lane/sublane reduction happens in the wrapper.
    tr = loss.shape[0]
    out_ref[0] += loss.reshape(tr // 8, 8, 128).sum(axis=0)


def focal_loss(pred, true, *, gamma=1.5, alpha=0.25, max_tile_rows=1024, n_par=2):
    """Mean focal loss over `pred` (logits) and `true` (targets) of identical shape."""
    assert pred.shape == true.shape
    n_total = pred.size
    lanes = 128

    # Keep native floating dtype in HBM (bf16 stays bf16); math is f32 in-kernel.
    compute_dtype = pred.dtype if jnp.issubdtype(pred.dtype, jnp.floating) else jnp.float32
    pred_flat = pred.reshape(-1).astype(compute_dtype)
    true_flat = true.reshape(-1).astype(compute_dtype)

    rows = pl.cdiv(n_total, lanes)
    if rows < n_par * 16:              # too small to split across cores
        n_par = 1
    rows_per_par = pl.cdiv(rows, n_par)
    n_steps = pl.cdiv(rows_per_par, max_tile_rows)
    # Multiple of 16 rows: valid sublane tiling for both f32 and bf16 inputs.
    tile_rows = _round_up(pl.cdiv(rows_per_par, n_steps), 16)
    rows_per_par = n_steps * tile_rows
    rows_padded = rows_per_par * n_par
    n_padded = rows_padded * lanes

    # Pad with (pred=+40, true=1): contributes exactly 0 loss in f32.
    pad = n_padded - n_total
    if pad:
        pred_flat = jnp.concatenate(
            [pred_flat, jnp.full((pad,), 40.0, dtype=compute_dtype)])
        true_flat = jnp.concatenate(
            [true_flat, jnp.full((pad,), 1.0, dtype=compute_dtype)])

    pred2d = pred_flat.reshape(rows_padded, lanes)
    true2d = true_flat.reshape(rows_padded, lanes)

    kernel = functools.partial(
        _focal_loss_kernel, gamma=float(gamma), alpha=float(alpha))

    itemsize = jnp.dtype(compute_dtype).itemsize
    cost = pl.CostEstimate(
        flops=16 * n_padded,
        transcendentals=3 * n_padded,                     # exp, log1p, sqrt
        bytes_accessed=2 * n_padded * itemsize + n_par * 8 * lanes * 4,
    )

    in_spec = pl.BlockSpec(
        (tile_rows, lanes), lambda j, k: (j * n_steps + k, 0))

    partials = pl.pallas_call(
        kernel,
        out_shape=jax.ShapeDtypeStruct((n_par, 8, lanes), jnp.float32),
        grid_spec=pltpu.PrefetchScalarGridSpec(
            num_scalar_prefetch=0,
            grid=(n_par, n_steps),
            in_specs=[in_spec, in_spec],
            out_specs=pl.BlockSpec((1, 8, lanes), lambda j, k: (j, 0, 0)),
        ),
        compiler_params=pltpu.CompilerParams(
            dimension_semantics=("parallel", "arbitrary"),
        ),
        cost_estimate=cost,
    )(pred2d, true2d)

    # reduction == 'mean' (default for nn.BCEWithLogitsLoss)
    return partials.sum() / jnp.float32(n_total)


def _focal_loss_ref(pred, true, gamma=1.5, alpha=0.25):
    x = pred.astype(jnp.float32)
    y = true.astype(jnp.float32)
    bce = jnp.maximum(x, 0.0) - x * y + jnp.log1p(jnp.exp(-jnp.abs(x)))
    p = jax.nn.sigmoid(x)
    p_t = y * p + (1.0 - y) * (1.0 - alpha)
    alpha_factor = y * alpha + (1.0 - y) * (1.0 - alpha)
    loss = bce * alpha_factor * (1.0 - p_t) ** gamma
    return loss.mean()


if __name__ == "__main__":
    key = jax.random.PRNGKey(0)
    k1, k2 = jax.random.split(key)
    # Small NCHW shapes consistent with a detection-head output: (B, C, H, W)
    shape = (2, 4, 16, 16)
    pred = jax.random.normal(k1, shape, dtype=jnp.float32) * 2.0          # logits
    true = (jax.random.uniform(k2, shape) > 0.7).astype(jnp.float32)      # binary targets

    out = focal_loss(pred, true, gamma=1.5, alpha=0.25)
    out = jax.block_until_ready(out)

    ref = _focal_loss_ref(pred, true, gamma=1.5, alpha=0.25)
    assert jnp.allclose(out, ref, rtol=1e-5, atol=1e-6), (out, ref)
    print("KERNEL_OK")
</pallas_src>

<mosaic_0001>
module attributes {stable_mosaic.version = 11 : i64} {
  func.func @_focal_loss_kernel(%arg0: i32, %arg1: i32, %arg2: memref<16x128xf32, #tpu.memory_space<vmem>>, %arg3: memref<16x128xf32, #tpu.memory_space<vmem>>, %arg4: memref<1x8x128xf32, #tpu.memory_space<vmem>>) attributes {dimension_semantics = [#tpu.dimension_semantics<parallel>, #tpu.dimension_semantics<arbitrary>], iteration_bounds = array<i64: 1, 1>, scalar_prefetch = 0 : i64, scratch_operands = 0 : i64, tpu.core_type = #tpu.core_type<tc>, window_params = [{transform_indices = @transform_0, window_bounds = array<i64: 16, 128>}, {transform_indices = @transform_1, window_bounds = array<i64: 16, 128>}, {transform_indices = @transform_2, window_bounds = array<i64: 1, 8, 128>}]} {
    %c0_i32 = arith.constant 0 : i32
    %0 = arith.cmpi eq, %arg1, %c0_i32 : i32
    %1 = arith.extui %0 : i1 to i32
    %c0_i32_0 = arith.constant 0 : i32
    %2 = arith.cmpi ne, %1, %c0_i32_0 : i32
    scf.if %2 {
      %cst_21 = arith.constant 0.000000e+00 : f32
      %50 = vector.broadcast %cst_21 : f32 to vector<1x8x128xf32>
      %c0_22 = arith.constant 0 : index
      %c0_23 = arith.constant 0 : index
      %c0_24 = arith.constant 0 : index
      %51 = vector.load %arg4[%c0_22, %c0_23, %c0_24] : memref<1x8x128xf32, #tpu.memory_space<vmem>>, vector<1x8x128xf32>
      tpu.vector_store %arg4[%c0_22, %c0_23, %c0_24], %50 {strides = array<i32>} : memref<1x8x128xf32, #tpu.memory_space<vmem>>, vector<1x8x128xf32>,
    } else {
    }
    %c0 = arith.constant 0 : index
    %c0_1 = arith.constant 0 : index
    %3 = vector.load %arg2[%c0, %c0_1] : memref<16x128xf32, #tpu.memory_space<vmem>>, vector<16x128xf32>
    %c0_2 = arith.constant 0 : index
    %c0_3 = arith.constant 0 : index
    %4 = vector.load %arg3[%c0_2, %c0_3] : memref<16x128xf32, #tpu.memory_space<vmem>>, vector<16x128xf32>
    %5 = math.absf %3 : vector<16x128xf32>
    %cst = arith.constant 0.000000e+00 : f32
    %6 = vector.broadcast %cst : f32 to vector<16x128xf32>
    %7 = arith.subf %6, %5 : vector<16x128xf32>
    %8 = math.exp %7 : vector<16x128xf32>
    %cst_4 = arith.constant 0.000000e+00 : f32
    %9 = vector.broadcast %cst_4 : f32 to vector<16x128xf32>
    %10 = arith.maximumf %3, %9 : vector<16x128xf32>
    %11 = arith.mulf %3, %4 : vector<16x128xf32>
    %12 = arith.subf %10, %11 : vector<16x128xf32>
    %13 = math.log1p %8 : vector<16x128xf32>
    %14 = arith.addf %12, %13 : vector<16x128xf32>
    %cst_5 = arith.constant 1.000000e+00 : f32
    %15 = vector.broadcast %cst_5 : f32 to vector<16x128xf32>
    %16 = arith.addf %15, %8 : vector<16x128xf32>
    %cst_6 = arith.constant 1.000000e+00 : f32
    %17 = vector.broadcast %cst_6 : f32 to vector<16x128xf32>
    %18 = arith.divf %17, %16 : vector<16x128xf32>
    %cst_7 = arith.constant 0.000000e+00 : f32
    %19 = vector.broadcast %cst_7 : f32 to vector<16x128xf32>
    %20 = arith.cmpf oge, %3, %19 : vector<16x128xf32>
    %21 = arith.mulf %8, %18 : vector<16x128xf32>
    %22 = arith.select %20, %18, %21 : vector<16x128xi1>, vector<16x128xf32>
    %23 = arith.mulf %4, %22 : vector<16x128xf32>
    %cst_8 = arith.constant 1.000000e+00 : f32
    %24 = vector.broadcast %cst_8 : f32 to vector<16x128xf32>
    %25 = arith.subf %24, %4 : vector<16x128xf32>
    %cst_9 = arith.constant 7.500000e-01 : f32
    %26 = vector.broadcast %cst_9 : f32 to vector<16x128xf32>
    %27 = arith.mulf %25, %26 : vector<16x128xf32>
    %28 = arith.addf %23, %27 : vector<16x128xf32>
    %cst_10 = arith.constant 2.500000e-01 : f32
    %29 = vector.broadcast %cst_10 : f32 to vector<16x128xf32>
    %30 = arith.mulf %4, %29 : vector<16x128xf32>
    %cst_11 = arith.constant 1.000000e+00 : f32
    %31 = vector.broadcast %cst_11 : f32 to vector<16x128xf32>
    %32 = arith.subf %31, %4 : vector<16x128xf32>
    %cst_12 = arith.constant 7.500000e-01 : f32
    %33 = vector.broadcast %cst_12 : f32 to vector<16x128xf32>
    %34 = arith.mulf %32, %33 : vector<16x128xf32>
    %35 = arith.addf %30, %34 : vector<16x128xf32>
    %cst_13 = arith.constant 1.000000e+00 : f32
    %36 = vector.broadcast %cst_13 : f32 to vector<16x128xf32>
    %37 = arith.subf %36, %28 : vector<16x128xf32>
    %38 = math.sqrt %37 : vector<16x128xf32>
    %39 = arith.mulf %37, %38 : vector<16x128xf32>
    %40 = arith.mulf %14, %35 : vector<16x128xf32>
    %41 = arith.mulf %40, %39 : vector<16x128xf32>
    %c0_14 = arith.constant 0 : index
    %c0_15 = arith.constant 0 : index
    %c0_16 = arith.constant 0 : index
    %42 = vector.load %arg4[%c0_14, %c0_15, %c0_16] : memref<1x8x128xf32, #tpu.memory_space<vmem>>, vector<1x8x128xf32>
    %43 = vector.shape_cast %42 : vector<1x8x128xf32> to vector<8x128xf32>
    %44 = vector.shape_cast %41 : vector<16x128xf32> to vector<2x8x128xf32>
    %cst_17 = arith.constant dense<0.000000e+00> : vector<8x128xf32>
    %45 = vector.multi_reduction <add>, %44, %cst_17 [0] : vector<2x8x128xf32> to vector<8x128xf32>
    %46 = arith.addf %43, %45 : vector<8x128xf32>
    %c0_18 = arith.constant 0 : index
    %c0_19 = arith.constant 0 : index
    %c0_20 = arith.constant 0 : index
    %47 = vector.load %arg4[%c0_18, %c0_19, %c0_20] : memref<1x8x128xf32, #tpu.memory_space<vmem>>, vector<1x8x128xf32>
    %48 = vector.shape_cast %47 : vector<1x8x128xf32> to vector<8x128xf32>
    %49 = vector.shape_cast %46 : vector<8x128xf32> to vector<1x8x128xf32>
    tpu.vector_store %arg4[%c0_18, %c0_19, %c0_20], %49 {strides = array<i32>} : memref<1x8x128xf32, #tpu.memory_space<vmem>>, vector<1x8x128xf32>,
    return
  }
  func.func @transform_0(%arg0: i32, %arg1: i32) -> (i32, i32) {
    %c1_i32 = arith.constant 1 : i32
    %0 = arith.muli %arg0, %c1_i32 : i32
    %1 = arith.addi %0, %arg1 : i32
    %c0_i32 = arith.constant 0 : i32
    %c0_i32_0 = arith.constant 0 : i32
    return %1, %c0_i32 : i32, i32
  }
  func.func @transform_1(%arg0: i32, %arg1: i32) -> (i32, i32) {
    %c1_i32 = arith.constant 1 : i32
    %0 = arith.muli %arg0, %c1_i32 : i32
    %1 = arith.addi %0, %arg1 : i32
    %c0_i32 = arith.constant 0 : i32
    %c0_i32_0 = arith.constant 0 : i32
    return %1, %c0_i32 : i32, i32
  }
  func.func @transform_2(%arg0: i32, %arg1: i32) -> (i32, i32, i32) {
    %c0_i32 = arith.constant 0 : i32
    %c0_i32_0 = arith.constant 0 : i32
    %c0_i32_1 = arith.constant 0 : i32
    return %arg0, %c0_i32, %c0_i32_0 : i32, i32, i32
  }
}

</mosaic_0001>

<bundles_post_ra>
// kernel: tpu_custom_call.1
= control target key start
LH: loop header
LB: loop body
LE: loop exit
PB: predicated region body
PF: predicated region fallthrough
CT: control target
= control target key end

     0   :  { %7 = vsyncpa [#allocation3], 0  ;;  %s370_s0 = inlined_call_operand.hbm [shape: f32[16,128], index: 0, kind: input, shape index: {}]   ;;  %s371_s1 = inlined_call_operand.hbm [shape: f32[16,128], index: 1, kind: input, shape index: {}]   ;;  %s372_s2 = inlined_call_operand.hbm [shape: f32[1,8,128], index: 2, kind: output, shape index: {}]  }
   0x1   :  { %8 = vsyncpa [#allocation6], 0 }
   0x2   :  { %9 = vsyncpa [#allocation4], 0  ;;  %s18_s11 = sshll.u32 %s370_s0, 4  ;;  %s303_s12 = smov [#allocation2]   ;;  %s19_s11 = int_to_ptr.hbm [resolvable:$true] %s18_s11 }
   0x3   :  { %s20_s13 = sshll.u32 %s303_s12, 4  ;;  %s35_s16 = sshll.u32 %s371_s1, 4  ;;  %s21_s13 = int_to_ptr.vmem [resolvable:$true] %s20_s13  ;;  %s36_s16 = int_to_ptr.hbm [resolvable:$true] %s35_s16 }
   0x4   :  { %s304_s17 = smov 128   ;;  %s305_s18 = smov 8  }
   0x5   :  { %26 = dma.hbm_to_vmem [thread:$0]  %s19_s11, 256, %s21_s13, [#allocation3], %s304_s17, %s304_s17, %s305_s18  }
   0x6   :  { %s306_s19 = smov [#allocation5]  }
   0x7   :  { %s37_s20 = sshll.u32 %s306_s19, 4  ;;  %s38_s20 = int_to_ptr.vmem [resolvable:$true] %s37_s20 }
   0x8   :  { %43 = dma.hbm_to_vmem [thread:$0]  %s36_s16, 256, %s38_s20, [#allocation6], %s304_s17, %s304_s17, %s305_s18  }
   0x9   :  { %297 = dma.done.wait [#allocation3], 256  }
   0xa   :  { %298 = vsyncadd [#allocation3], 4294967040 }
   0xb   :  { %299 = dma.done.wait [#allocation6], 256  }
   0xc   :  { %300 = vsyncadd [#allocation6], 4294967040  ;;  %v329_v0 = vld [vmem:[#allocation2] sm:$0xff]  ;;  %v331_v1 = vld [vmem:[#allocation2 + $0x8] sm:$0xff]  ;;  %s307_s0 = smov [#allocation7]   ;;  %s192_s23 = sshll.u32 %s372_s2, 4  ;;  %s193_s23 = int_to_ptr.hbm [resolvable:$true] %s192_s23 }
   0xd   :  { %v65_v2 = vand.u32 2147483647, %v329_v0  ;;  %v66_v3 = vand.u32 2147483647, %v331_v1  ;;  %v63_v22 = vld [vmem:[#allocation5] sm:$0xff]  ;;  %v64_v24 = vld [vmem:[#allocation5 + $0x8] sm:$0xff] }
   0xe   :  { %v139_v30 = vsub.f32 1.0, %v63_v22  ;;  %v140_v32 = vsub.f32 1.0, %v64_v24  ;;  %vm131_vm8 = vcmp.ge.f32.partialorder %v329_v0, 0.0  ;;  %vm132_vm9 = vcmp.ge.f32.partialorder %v331_v1, 0.0  ;;  %s190_s1 = sshll.u32 %s307_s0, 4  ;;  %s191_s1 = int_to_ptr.vmem [resolvable:$true] %s190_s1 }
   0xf   :  { %v67_v4 = vsub.f32 0.0, %v65_v2  ;;  %v68_v5 = vsub.f32 0.0, %v66_v3  ;;  %v73_v58 = vmax.f32 %v329_v0, 0.0  ;;  %v74_v59 = vmax.f32 %v331_v1, 0.0 }
  0x10   :  { %v141_v38 = vmul.f32 0.75, %v139_v30  ;;  %v142_v40 = vmul.f32 0.75, %v140_v32  ;;  %v75_v60 = vmul.f32 %v63_v22, %v329_v0  ;;  %v76_v62 = vmul.f32 %v64_v24, %v331_v1 }
  0x11   :  { %v69_v6 = vmul.f32 1.442695, %v67_v4  ;;  %v71_v7 = vmul.f32 1.442695, %v68_v5  ;;  %v146_v1 = vmul.f32 0.25, %v64_v24 }
  0x13   :  { %209 = vpow2.f32 %v69_v6 }
  0x14   :  { %211 = vpow2.f32 %v71_v7 }
  0x19   :  { %v335_v8 = vpop.eup %209 }
  0x1a   :  { %v337_v9 = vpop.eup %211  ;;  %v79_v10 = vadd.f32 1.0, %v335_v8  ;;  %v82_v48 = vmul.f32 -0.5, %v335_v8  ;;  %v85_v53 = vand.u32 2147483647, %v335_v8 }
  0x1b   :  { %v88_v11 = vadd.f32 1.0, %v337_v9  ;;  %v91_v49 = vmul.f32 -0.5, %v337_v9  ;;  %v94_v56 = vand.u32 2147483647, %v337_v9 }
  0x1c   :  { %213 = vrcp.f32 %v79_v10  ;;  %vm106_vm0 = vweird.f32 %v79_v10  ;;  %v112_v15 = vand.u32 2147483648, %v79_v10  ;;  %v110_v18 = vand.u32 2147483647, %v79_v10 }
  0x1d   :  { %215 = vrcp.f32 %v88_v11  ;;  %v127_v19 = vand.u32 2147483648, %v88_v11  ;;  %vm121_vm2 = vweird.f32 %v88_v11  ;;  %v125_v21 = vand.u32 2147483647, %v88_v11 }
  0x1e   :  { %v113_v25 = vor.u32 1.1754944e-38, %v112_v15  ;;  %vm111_vm5 = vcmp.eq.f32.partialorder %v110_v18, 8.507059e+37  ;;  %217 = vlog2.f32 %v79_v10  ;;  %v83_v51 = vadd.f32 1.0, %v82_v48 }
  0x1f   :  { %v128_v28 = vor.u32 1.1754944e-38, %v127_v19  ;;  %vm126_vm7 = vcmp.eq.f32.partialorder %v125_v21, 8.507059e+37  ;;  %219 = vlog2.f32 %v88_v11  ;;  %v92_v54 = vadd.f32 1.0, %v91_v49 }
  0x20   :  { %v84_v2 = vmul.f32 %v335_v8, %v83_v51  ;;  %vm354_vm10 = vcmp.lt.f32.partialorder %v85_v53, 0.0004427343  ;;  %vm359_vm11 = vcmp.lt.f32.partialorder %v94_v56, 0.0004427343 }
  0x21   :  { %v93_v6 = vmul.f32 %v337_v9, %v92_v54 }
  0x22   :  { %v214_v12 = vpop.eup %213 }
  0x23   :  { %v216_v13 = vpop.eup %215  ;;  %v102_v14 = vmul.f32 %v214_v12, %v79_v10  ;;  %vm107_vm1 = vweird.f32 %v214_v12 }
  0x24   :  { %v117_v16 = vmul.f32 %v216_v13, %v88_v11  ;;  %vm122_vm3 = vweird.f32 %v216_v13  ;;  %vm108_vm4 = vmor %vm106_vm0, %vm107_vm1  ;;  %v218_v50 = vpop.eup %217  ;;  %v77_v11 = vsub.f32 %v73_v58, %v75_v60 }
  0x25   :  { %v103_v17 = vsub.f32 1.0, %v102_v14  ;;  %vm123_vm6 = vmor %vm121_vm2, %vm122_vm3  ;;  %v220_v52 = vpop.eup %219  ;;  %v81_v63 = vmul.f32 0.6931472, %v218_v50  ;;  %v78_v14 = vsub.f32 %v74_v59, %v76_v62 }
  0x26   :  { %v118_v20 = vsub.f32 1.0, %v117_v16  ;;  %v90_v5 = vmul.f32 0.6931472, %v220_v52 }
  0x27   :  { %v104_v23 = vmul.f32 %v214_v12, %v103_v17 }
  0x28   :  { %v119_v26 = vmul.f32 %v216_v13, %v118_v20  ;;  %v96_v16 = vsel %vm359_vm11, %v93_v6, %v90_v5  ;;  %v148_v20 = vadd.f32 %v146_v1, %v142_v40 }
  0x29   :  { %v105_v27 = vadd.f32 %v214_v12, %v104_v23  ;;  %v98_v23 = vadd.f32 %v96_v16, %v78_v14 }
  0x2a   :  { %v120_v29 = vadd.f32 %v216_v13, %v119_v26 }
  0x2b   :  { %v109_v31 = vsel %vm108_vm4, %v214_v12, %v105_v27  ;;  %v145_v12 = vmul.f32 0.25, %v63_v22  ;;  %v178_v32 = vmul.f32 %v148_v20, %v98_v23 }
  0x2c   :  { %v114_v33 = vsel %vm111_vm5, %v113_v25, %v109_v31  ;;  %v124_v34 = vsel %vm123_vm6, %v216_v13, %v120_v29 }
  0x2d   :  { %v129_v35 = vsel %vm126_vm7, %v128_v28, %v124_v34  ;;  %v133_v36 = vmul.f32 %v335_v8, %v114_v33  ;;  %v87_v8 = vsel %vm354_vm10, %v84_v2, %v81_v63  ;;  %v147_v19 = vadd.f32 %v145_v12, %v141_v38 }
  0x2e   :  { %v134_v37 = vmul.f32 %v337_v9, %v129_v35  ;;  %v97_v18 = vadd.f32 %v87_v8, %v77_v11 }
  0x2f   :  { %v135_v39 = vsel %vm131_vm8, %v114_v33, %v133_v36 }
  0x30   :  { %v136_v41 = vsel %vm132_vm9, %v129_v35, %v134_v37  ;;  %v137_v42 = vmul.f32 %v135_v39, %v63_v22  ;;  %v177_v29 = vmul.f32 %v147_v19, %v97_v18 }
  0x31   :  { %v138_v43 = vmul.f32 %v136_v41, %v64_v24 }
  0x32   :  { %v143_v44 = vadd.f32 %v141_v38, %v137_v42 }
  0x33   :  { %v144_v45 = vadd.f32 %v142_v40, %v138_v43 }
  0x34   :  { %v149_v46 = vsub.f32 1.0, %v143_v44 }
  0x35   :  { %v150_v47 = vsub.f32 1.0, %v144_v45 }
  0x36   :  { %221 = vrsqrt.f32 %v149_v46  ;;  %vm158_vm12 = vcmp.eq.f32.partialorder %v149_v46, inf  ;;  %v161_v25 = vand.u32 2147483648, %v149_v46  ;;  %vm160_vm13 = vcmp.eq.f32.partialorder %v149_v46, 0.0 }
  0x37   :  { %223 = vrsqrt.f32 %v150_v47  ;;  %vm170_vm14 = vcmp.eq.f32.partialorder %v150_v47, inf  ;;  %v173_v26 = vand.u32 2147483648, %v150_v47  ;;  %vm172_vm15 = vcmp.eq.f32.partialorder %v150_v47, 0.0 }
  0x3c   :  { %v222_v55 = vpop.eup %221 }
  0x3d   :  { %v224_v57 = vpop.eup %223  ;;  %v152_v61 = vmul.f32 %v222_v55, %v149_v46 }
  0x3e   :  { %v164_v3 = vmul.f32 %v224_v57, %v150_v47 }
  0x3f   :  { %v153_v7 = vmul.f32 %v222_v55, %v152_v61 }
  0x40   :  { %v165_v0 = vmul.f32 %v224_v57, %v164_v3 }
  0x41   :  { %v154_v13 = vmul.f32 0.5, %v153_v7 }
  0x42   :  { %v166_v15 = vmul.f32 0.5, %v165_v0 }
  0x43   :  { %v155_v17 = vsub.f32 1.5, %v154_v13 }
  0x44   :  { %v167_v9 = vsub.f32 1.5, %v166_v15 }
  0x45   :  { %v156_v21 = vmul.f32 %v222_v55, %v155_v17 }
  0x46   :  { %v168_v22 = vmul.f32 %v224_v57, %v167_v9 }
  0x47   :  { %v157_v24 = vmul.f32 %v156_v21, %v149_v46 }
  0x48   :  { %v169_v27 = vmul.f32 %v168_v22, %v150_v47 }
  0x49   :  { %v159_v28 = vsel %vm158_vm12, %v149_v46, %v157_v24 }
  0x4a   :  { %v162_v30 = vsel %vm160_vm13, %v161_v25, %v159_v28  ;;  %v171_v31 = vsel %vm170_vm14, %v150_v47, %v169_v27 }
  0x4b   :  { %v174_v33 = vsel %vm172_vm15, %v173_v26, %v171_v31  ;;  %v175_v34 = vmul.f32 %v162_v30, %v149_v46 }
  0x4c   :  { %v176_v35 = vmul.f32 %v174_v33, %v150_v47 }
  0x4d   :  { %v179_v36 = vmul.f32 %v177_v29, %v175_v34 }
  0x4e   :  { %v180_v37 = vmul.f32 %v178_v32, %v176_v35 }
  0x50   :  { %v182_v38 = vadd.f32 %v180_v37, %v179_v36 }
  0x52   :  { %184 = vst [vmem:[#allocation7] sm:$0xff] %v182_v38 }
  0x53   :  { %195 = dma.vmem_to_hbm [thread:$0]  %s191_s1, 128, %s193_s23, [#allocation4]  }
  0x54   :  { %301 = dma.done.wait [#allocation4], 128  }
  0x55   :  { %302 = vsyncadd [#allocation4], 4294967168 }
  0x56   :  { %200 = vsyncpa [#allocation3], 1 }
  0x57   :  { %201 = vsyncpa [#allocation6], 1 }
  0x58   :  { %202 = vsyncpa [#allocation4], 1 }

</bundles_post_ra>
